<compile_context>
chip_gen: v6e
topology: v6e:2x2x1
jax: 0.10.0
libtpu: 0.0.40
codegen_flags: <defaults>
</compile_context>

<pallas_src>
import functools
import math
from typing import NamedTuple

import jax
import jax.numpy as jnp
from jax.experimental import pallas as pl
from jax.experimental.pallas import tpu as pltpu


_SUB = 16  # row-tile granularity; covers bf16 sublane packing for x / sigmoid blocks


def _round_up(a, b):
    return (a + b - 1) // b * b


def _tpu_vmem_defaults():
    """(vmem_limit_bytes, default row tile) per TPU generation."""
    try:
        cap = pltpu.get_tpu_info().vmem_capacity_bytes
    except Exception:  # very old jax / interpret mode: assume the smallest (v7x per-TC)
        cap = 64 * 1024 * 1024
    if cap >= 128 * 1024 * 1024:          # v5e / v6e: 128 MiB VMEM per core
        return 100 * 1024 * 1024, 512
    return 48 * 1024 * 1024, 256          # v7x: 64 MiB per core -> leave headroom


class PreparedWeight(NamedTuple):
    w: jax.Array          # (out_pad, in_features), MXU dtype, zero-padded columns
    out_features: int
    tile_f: int


def prepare_weight(weight, *, mxu_dtype=jnp.bfloat16, tile_f_cap=512):
    """Cast + zero-pad the (out, in) weight once; reuse the result across calls.

    mxu_dtype=jnp.bfloat16 halves weight DMA and uses the fast MXU path (f32
    accumulation); pass jnp.float32 for strict parity with the f32 reference.
    """
    out_f, in_f = weight.shape
    tile_f_cap = _round_up(tile_f_cap, 128)
    tile_f = min(tile_f_cap, _round_up(out_f, 128))   # lane-dense column tile
    out_pad = _round_up(out_f, tile_f)
    w = weight.astype(mxu_dtype)
    if out_pad != out_f:
        w = jnp.pad(w, ((0, out_pad - out_f), (0, 0)))
    return PreparedWeight(w, out_f, tile_f)


def _binary_angular_kernel(x_ref, w_ref, lab_ref, sig_ref, part_ref, *,
                           tile_n, tile_f, n_true, n_pad, out_true, out_pad,
                           cos_m, sin_m, eps, hard_labels):
    i = pl.program_id(0)
    j = pl.program_id(1)

    x = x_ref[...].astype(jnp.float32)               # (tile_n, in_f)
    lab = lab_ref[...]                               # (tile_n, 1) f32

    # F.normalize(x, p=2, dim=1): one EUP rsqrt (matches eps=1e-12 on the norm).
    sumsq = jnp.sum(x * x, axis=1, keepdims=True)
    xn = x * jax.lax.rsqrt(jnp.maximum(sumsq, 1e-24))

    # wf = x_norm @ W.T with the untransposed (tile_f, in_f) weight tile:
    # contract dim 1 of both operands; MXU dtype = weight dtype, f32 accumulation.
    wf = jax.lax.dot_general(
        xn.astype(w_ref.dtype), w_ref[...],
        dimension_numbers=(((1,), (1,)), ((), ())),
        preferred_element_type=jnp.float32)          # (tile_n, tile_f)

    c = jnp.clip(wf, -1.0 + eps, 1.0 - eps)
    # cos(acos(c) + m) = c*cos(m) - sqrt(1 - c^2)*sin(m)   (sin(acos(c)) >= 0)
    z_pos = c * cos_m - jnp.sqrt(1.0 - c * c) * sin_m

    if hard_labels:
        # labels in {0,1}: single log_sigmoid chain (EUP is the binding slot).
        # log(sigmoid(z)) = log_sigmoid(z);  log(1 - sigmoid(c)) = log_sigmoid(-c).
        L = jax.nn.log_sigmoid(jnp.where(lab > 0.5, z_pos, -c))
    else:
        # exact two-term form for soft labels
        L = lab * jax.nn.log_sigmoid(z_pos) + (1.0 - lab) * jax.nn.log_sigmoid(-c)

    # Exclude padded rows / columns from the mean.  Static checks: the masks
    # (and their full-tile multiplies) are only emitted when padding exists.
    if n_pad != n_true:
        rows = i * tile_n + jax.lax.broadcasted_iota(jnp.int32, (tile_n, 1), 0)
        L = L * (rows < n_true).astype(jnp.float32)
    if out_pad != out_true:
        cols = j * tile_f + jax.lax.broadcasted_iota(jnp.int32, (1, tile_f), 1)
        L = L * (cols < out_true).astype(jnp.float32)

    # Lane-dense full-width store; bf16 by default (halves the dominant HBM write).
    sig_ref[...] = jax.nn.sigmoid(wf).astype(sig_ref.dtype)
    # Per-tile partial sum, written as a full (8,128) block (no sub-tile stores).
    part_ref[...] = jnp.full((8, 128), jnp.sum(L), dtype=jnp.float32)


def binary_angular_loss(x, weight, labels, *, m=0.5, eps=1e-7,
                        hard_labels=True, sig_dtype=jnp.bfloat16,
                        tile_n=None, vmem_limit_bytes=None):
    """Forward pass of BinaryAngularLoss.

    x:       (N, in_features), f32 or bf16 (bf16 halves the x DMA; all math f32).
    weight:  raw (out_features, in_features) nn.Linear weight, or a
             PreparedWeight from prepare_weight() (preferred when reused).
    labels:  (N,), {0,1} by default; pass hard_labels=False for soft labels.
    Returns (-mean(L), sigmoid(wf)); sigmoid(wf) is bf16 unless sig_dtype=f32.
    """
    if not isinstance(weight, PreparedWeight):
        # TODO(synk): callers that reuse the weight should call prepare_weight once.
        weight = prepare_weight(weight)
    w_pad, out_f, tile_f = weight
    out_pad, in_f = w_pad.shape
    grid_f = out_pad // tile_f

    n = x.shape[0]
    assert x.shape[1] == in_f and labels.shape[0] == n

    # Keep x in f32/bf16 as given (upcast in-kernel); anything else -> f32.
    if x.dtype != jnp.float32 and x.dtype != jnp.bfloat16:
        x = x.astype(jnp.float32)

    default_vmem, default_tile_n = _tpu_vmem_defaults()
    vmem_limit = vmem_limit_bytes or default_vmem
    tile_n = tile_n or default_tile_n

    # Row-tile selection: multiple of _SUB, capped so the double-buffered x
    # block stays well under the VMEM limit, and split >= 2 ways when the out
    # dim is not tiled so both v7x TensorCores get work.
    n_sub = _round_up(n, _SUB)
    tile_n = _round_up(min(tile_n, n_sub), _SUB)
    row_bytes = in_f * x.dtype.itemsize
    cap_rows = max(_SUB, (vmem_limit // 4) // max(row_bytes, 1) // _SUB * _SUB)
    tile_n = min(tile_n, cap_rows)
    if grid_f == 1 and n_sub >= 2 * _SUB:
        tile_n = min(tile_n, _round_up((n_sub + 1) // 2, _SUB))
    n_pad = _round_up(n, tile_n)
    grid_n = n_pad // tile_n

    lab = labels.reshape(n, 1).astype(jnp.float32)
    if n_pad != n:                        # only pad when the shapes require it
        x = jnp.pad(x, ((0, n_pad - n), (0, 0)))
        lab = jnp.pad(lab, ((0, n_pad - n), (0, 0)))

    kernel = functools.partial(
        _binary_angular_kernel,
        tile_n=tile_n, tile_f=tile_f, n_true=n, n_pad=n_pad,
        out_true=out_f, out_pad=out_pad,
        cos_m=math.cos(m), sin_m=math.sin(m), eps=eps, hard_labels=hard_labels)

    if grid_f == 1:
        # Constant index_map: the weight is DMA'd once and stays resident; a
        # single buffer saves tile_f*in_f*itemsize of VMEM vs. double buffering.
        try:
            w_spec = pl.BlockSpec((tile_f, in_f), lambda i, j: (0, 0),
                                  pipeline_mode=pl.Buffered(1))
        except (TypeError, AttributeError):   # older jax without pipeline_mode
            w_spec = pl.BlockSpec((tile_f, in_f), lambda i, j: (0, 0))
    else:
        w_spec = pl.BlockSpec((tile_f, in_f), lambda i, j: (j, 0))

    sig_pad, partials = pl.pallas_call(
        kernel,
        grid=(grid_n, grid_f),
        in_specs=[
            pl.BlockSpec((tile_n, in_f), lambda i, j: (i, 0)),
            w_spec,
            pl.BlockSpec((tile_n, 1), lambda i, j: (i, 0)),
        ],
        out_specs=(
            pl.BlockSpec((tile_n, tile_f), lambda i, j: (i, j)),
            pl.BlockSpec((8, 128), lambda i, j: (i, j)),
        ),
        out_shape=(
            jax.ShapeDtypeStruct((n_pad, out_pad), sig_dtype),
            jax.ShapeDtypeStruct((grid_n * 8, grid_f * 128), jnp.float32),
        ),
        compiler_params=pltpu.CompilerParams(
            dimension_semantics=("parallel", "parallel"),   # disjoint blocks
            vmem_limit_bytes=vmem_limit),
    )(x, w_pad, lab)

    # Mean over the TRUE N * out_features (padding already masked to zero).
    tile_sums = partials[::8, ::128]          # one scalar per grid tile
    loss = -(jnp.sum(tile_sums) / (n * out_f))

    sig_wf = sig_pad
    if n_pad != n or out_pad != out_f:        # only slice when padding exists
        sig_wf = sig_pad[:n, :out_f]
    return loss, sig_wf


if __name__ == "__main__":
    N, in_features, out_features = 16, 32, 16
    key = jax.random.PRNGKey(0)
    kx, kw, kl = jax.random.split(key, 3)

    x = jax.random.normal(kx, (N, in_features), dtype=jnp.float32)
    # deterministic nn.Linear-style init: U(-1/sqrt(in), 1/sqrt(in)), shape (out, in)
    bound = 1.0 / math.sqrt(in_features)
    weight = jax.random.uniform(
        kw, (out_features, in_features), minval=-bound, maxval=bound, dtype=jnp.float32)
    labels = jax.random.bernoulli(kl, 0.5, (N,)).astype(jnp.float32)

    w_prep = prepare_weight(weight)           # hoisted bf16 cast + pad (reused across calls)
    loss, sig_wf = binary_angular_loss(x, w_prep, labels)
    jax.block_until_ready((loss, sig_wf))

    # Pure-JAX f32 reference of the PyTorch forward.
    def reference(x, weight, labels, m=0.5, eps=1e-7):
        xn = x / jnp.maximum(jnp.linalg.norm(x, axis=1, keepdims=True), 1e-12)
        wf = xn @ weight.T
        theta = jnp.arccos(jnp.clip(wf, -1.0 + eps, 1.0 - eps))
        pos = jax.nn.sigmoid(jnp.cos(theta + m))
        neg = jax.nn.sigmoid(jnp.cos(theta))
        lab = labels[:, None]
        L = jnp.mean(lab * jnp.log(pos) + (1.0 - lab) * jnp.log(1.0 - neg))
        return -L, jax.nn.sigmoid(wf)

    ref_loss, ref_sig = reference(x, weight, labels)
    assert loss.shape == () and sig_wf.shape == (N, out_features)
    assert bool(jnp.isfinite(loss))
    # bf16 MXU + bf16 sigmoid storage -> loose tolerance vs. the f32 reference.
    assert abs(float(loss) - float(ref_loss)) < 3e-2, (float(loss), float(ref_loss))
    assert float(jnp.max(jnp.abs(sig_wf.astype(jnp.float32) - ref_sig))) < 3e-2
    print("KERNEL_OK")
</pallas_src>

<mosaic_0001>
module attributes {stable_mosaic.version = 11 : i64} {
  func.func @_binary_angular_kernel(%arg0: i32, %arg1: i32, %arg2: memref<16x32xf32, #tpu.memory_space<vmem>>, %arg3: memref<128x32xbf16, #tpu.memory_space<vmem>>, %arg4: memref<16x1xf32, #tpu.memory_space<vmem>>, %arg5: memref<16x128xbf16, #tpu.memory_space<vmem>>, %arg6: memref<8x128xf32, #tpu.memory_space<vmem>>) attributes {dimension_semantics = [#tpu.dimension_semantics<parallel>, #tpu.dimension_semantics<parallel>], iteration_bounds = array<i64: 1, 1>, scalar_prefetch = 0 : i64, scratch_operands = 0 : i64, tpu.core_type = #tpu.core_type<tc>, window_params = [{transform_indices = @transform_0, window_bounds = array<i64: 16, 32>}, {pipeline_mode = #tpu.pipeline_mode<synchronous>, transform_indices = @transform_1, window_bounds = array<i64: 128, 32>}, {transform_indices = @transform_2, window_bounds = array<i64: 16, 1>}, {transform_indices = @transform_3, window_bounds = array<i64: 16, 128>}, {transform_indices = @transform_4, window_bounds = array<i64: 8, 128>}]} {
    %c0 = arith.constant 0 : index
    %c0_0 = arith.constant 0 : index
    %0 = vector.load %arg2[%c0, %c0_0] : memref<16x32xf32, #tpu.memory_space<vmem>>, vector<16x32xf32>
    %c0_1 = arith.constant 0 : index
    %c0_2 = arith.constant 0 : index
    %1 = vector.load %arg4[%c0_1, %c0_2] : memref<16x1xf32, #tpu.memory_space<vmem>>, vector<16x1xf32>
    %2 = arith.mulf %0, %0 : vector<16x32xf32>
    %cst = arith.constant dense<0.000000e+00> : vector<16xf32>
    %3 = vector.multi_reduction <add>, %2, %cst [1] : vector<16x32xf32> to vector<16xf32>
    %4 = vector.shape_cast %3 : vector<16xf32> to vector<16x1xf32>
    %cst_3 = arith.constant 1.000000e-24 : f32
    %5 = vector.broadcast %cst_3 : f32 to vector<16x1xf32>
    %6 = arith.maximumf %4, %5 : vector<16x1xf32>
    %7 = math.rsqrt %6 : vector<16x1xf32>
    %8 = vector.broadcast %7 : vector<16x1xf32> to vector<16x32xf32>
    %9 = arith.mulf %0, %8 : vector<16x32xf32>
    %10 = arith.truncf %9 : vector<16x32xf32> to vector<16x32xbf16>
    %c0_4 = arith.constant 0 : index
    %c0_5 = arith.constant 0 : index
    %11 = vector.load %arg3[%c0_4, %c0_5] : memref<128x32xbf16, #tpu.memory_space<vmem>>, vector<128x32xbf16>
    %cst_6 = arith.constant dense<0.000000e+00> : vector<16x128xf32>
    %12 = tpu.matmul %10, %11, %cst_6 {dimension_numbers = #tpu.dot_dimension_numbers<[1], [1], [0], [0], [0, 0, 1, 0], [], []>} : vector<16x32xbf16>, vector<128x32xbf16>, vector<16x128xf32> -> vector<16x128xf32>
    %cst_7 = arith.constant -0.99999988 : f32
    %cst_8 = arith.constant 0.99999988 : f32
    %13 = vector.broadcast %cst_7 : f32 to vector<16x128xf32>
    %14 = arith.maximumf %13, %12 : vector<16x128xf32>
    %15 = vector.broadcast %cst_8 : f32 to vector<16x128xf32>
    %16 = arith.minimumf %15, %14 : vector<16x128xf32>
    %cst_9 = arith.constant 0.87758255 : f32
    %17 = vector.broadcast %cst_9 : f32 to vector<16x128xf32>
    %18 = arith.mulf %16, %17 : vector<16x128xf32>
    %19 = arith.mulf %16, %16 : vector<16x128xf32>
    %cst_10 = arith.constant 1.000000e+00 : f32
    %20 = vector.broadcast %cst_10 : f32 to vector<16x128xf32>
    %21 = arith.subf %20, %19 : vector<16x128xf32>
    %22 = math.sqrt %21 : vector<16x128xf32>
    %cst_11 = arith.constant 0.47942555 : f32
    %23 = vector.broadcast %cst_11 : f32 to vector<16x128xf32>
    %24 = arith.mulf %22, %23 : vector<16x128xf32>
    %25 = arith.subf %18, %24 : vector<16x128xf32>
    %cst_12 = arith.constant 5.000000e-01 : f32
    %26 = vector.broadcast %cst_12 : f32 to vector<16x1xf32>
    %27 = arith.cmpf ogt, %1, %26 : vector<16x1xf32>
    %cst_13 = arith.constant 0.000000e+00 : f32
    %28 = vector.broadcast %cst_13 : f32 to vector<16x128xf32>
    %29 = arith.subf %28, %16 : vector<16x128xf32>
    %30 = vector.shape_cast %27 : vector<16x1xi1> to vector<16x1xi1>
    %31 = vector.broadcast %30 : vector<16x1xi1> to vector<16x128xi1>
    %32 = arith.select %31, %25, %29 : vector<16x128xi1>, vector<16x128xf32>
    %cst_14 = arith.constant 0.000000e+00 : f32
    %33 = vector.broadcast %cst_14 : f32 to vector<16x128xf32>
    %34 = arith.subf %33, %32 : vector<16x128xf32>
    %cst_15 = arith.constant 0.000000e+00 : f32
    %35 = vector.broadcast %cst_15 : f32 to vector<16x128xf32>
    %36 = arith.maximumf %34, %35 : vector<16x128xf32>
    %37 = vector.broadcast %cst_15 : f32 to vector<16x128xf32>
    %38 = arith.subf %34, %37 : vector<16x128xf32>
    %39 = arith.cmpf one, %38, %38 : vector<16x128xf32>
    %40 = vector.broadcast %cst_15 : f32 to vector<16x128xf32>
    %41 = arith.addf %34, %40 : vector<16x128xf32>
    %42 = math.absf %38 : vector<16x128xf32>
    %cst_16 = arith.constant 0.000000e+00 : f32
    %43 = vector.broadcast %cst_16 : f32 to vector<16x128xf32>
    %44 = arith.subf %43, %42 : vector<16x128xf32>
    %45 = math.exp %44 : vector<16x128xf32>
    %46 = math.log1p %45 : vector<16x128xf32>
    %47 = arith.addf %36, %46 : vector<16x128xf32>
    %48 = arith.select %39, %41, %47 : vector<16x128xi1>, vector<16x128xf32>
    %cst_17 = arith.constant 0.000000e+00 : f32
    %49 = vector.broadcast %cst_17 : f32 to vector<16x128xf32>
    %50 = arith.subf %49, %48 : vector<16x128xf32>
    %c128_i32 = arith.constant 128 : i32
    %51 = arith.muli %arg1, %c128_i32 : i32
    %52 = tpu.iota {dimensions = array<i32: 1>} : vector<1x128xi32>
    %53 = vector.broadcast %51 : i32 to vector<1x128xi32>
    %54 = arith.addi %53, %52 : vector<1x128xi32>
    %c16_i32 = arith.constant 16 : i32
    %55 = vector.broadcast %c16_i32 : i32 to vector<1x128xi32>
    %56 = arith.cmpi slt, %54, %55 : vector<1x128xi32>
    %57 = arith.extui %56 : vector<1x128xi1> to vector<1x128xi32>
    %58 = arith.sitofp %57 : vector<1x128xi32> to vector<1x128xf32>
    %59 = vector.broadcast %58 : vector<1x128xf32> to vector<16x128xf32>
    %60 = arith.mulf %50, %59 : vector<16x128xf32>
    %61 = arith.negf %12 : vector<16x128xf32>
    %62 = math.exp %61 : vector<16x128xf32>
    %cst_18 = arith.constant 1.000000e+00 : f32
    %63 = vector.broadcast %cst_18 : f32 to vector<16x128xf32>
    %64 = arith.addf %63, %62 : vector<16x128xf32>
    %65 = arith.divf %63, %64 : vector<16x128xf32>
    %66 = arith.truncf %65 : vector<16x128xf32> to vector<16x128xbf16>
    %c0_19 = arith.constant 0 : index
    %c0_20 = arith.constant 0 : index
    %67 = vector.load %arg5[%c0_19, %c0_20] : memref<16x128xbf16, #tpu.memory_space<vmem>>, vector<16x128xbf16>
    tpu.vector_store %arg5[%c0_19, %c0_20], %66 {strides = array<i32>} : memref<16x128xbf16, #tpu.memory_space<vmem>>, vector<16x128xbf16>,
    %68 = vector.shape_cast %60 : vector<16x128xf32> to vector<1x16x128xf32>
    %cst_21 = arith.constant dense<0.000000e+00> : vector<1xf32>
    %69 = vector.multi_reduction <add>, %68, %cst_21 [1, 2] : vector<1x16x128xf32> to vector<1xf32>
    %70 = vector.shape_cast %69 : vector<1xf32> to vector<1x1x1xf32>
    %71 = vector.extract %70[0, 0, 0] : f32 from vector<1x1x1xf32>
    %72 = vector.broadcast %71 : f32 to vector<8x128xf32>
    %c0_22 = arith.constant 0 : index
    %c0_23 = arith.constant 0 : index
    %73 = vector.load %arg6[%c0_22, %c0_23] : memref<8x128xf32, #tpu.memory_space<vmem>>, vector<8x128xf32>
    tpu.vector_store %arg6[%c0_22, %c0_23], %72 {strides = array<i32>} : memref<8x128xf32, #tpu.memory_space<vmem>>, vector<8x128xf32>,
    return
  }
  func.func @transform_0(%arg0: i32, %arg1: i32) -> (i32, i32) {
    %c0_i32 = arith.constant 0 : i32
    %c0_i32_0 = arith.constant 0 : i32
    return %arg0, %c0_i32 : i32, i32
  }
  func.func @transform_1(%arg0: i32, %arg1: i32) -> (i32, i32) {
    %c0_i32 = arith.constant 0 : i32
    %c0_i32_0 = arith.constant 0 : i32
    %c0_i32_1 = arith.constant 0 : i32
    return %c0_i32, %c0_i32_0 : i32, i32
  }
  func.func @transform_2(%arg0: i32, %arg1: i32) -> (i32, i32) {
    %c0_i32 = arith.constant 0 : i32
    %c0_i32_0 = arith.constant 0 : i32
    return %arg0, %c0_i32 : i32, i32
  }
  func.func @transform_3(%arg0: i32, %arg1: i32) -> (i32, i32) {
    %c0_i32 = arith.constant 0 : i32
    return %arg0, %arg1 : i32, i32
  }
  func.func @transform_4(%arg0: i32, %arg1: i32) -> (i32, i32) {
    %c0_i32 = arith.constant 0 : i32
    return %arg0, %arg1 : i32, i32
  }
}

</mosaic_0001>

<bundles_post_ra>
// kernel: tpu_custom_call.1
= control target key start
LH: loop header
LB: loop body
LE: loop exit
PB: predicated region body
PF: predicated region fallthrough
CT: control target
= control target key end

     0   :  { %10 = vsyncpa [#allocation3], 0  ;;  %vm25_vm0 = vcmask 261120   ;;  %v460_v4 = vmov 0.0   ;;  %s565_s0 = inlined_call_operand.vmem [shape: f32[16,32], index: 0, kind: input, shape index: {}]   ;;  %s566_s1 = inlined_call_operand.vmem [shape: bf16[128,32], index: 1, kind: input, shape index: {}]   ;;  %s567_s2 = inlined_call_operand.vmem [shape: f32[16,1], index: 2, kind: input, shape index: {}]   ;;  %s568_s3 = inlined_call_operand.hbm [shape: bf16[16,128], index: 3, kind: output, shape index: {0}]   ;;  %s569_s4 = inlined_call_operand.hbm [shape: f32[8,128], index: 4, kind: output, shape index: {1}]  }
   0x1   :  { %v495_v0 = vld [vmem:[%s565_s0] sm:$0xff]  ;;  %v500_v1 = vld [vmem:[%s565_s0 + $0x8] sm:$0xff]  ;;  %353 = vmatprep.subr.bf16.mxu0 %v460_v4  ;;  %v384_v5 = vld [vmem:[%s566_s1 + $0x38] sm:$0xff]  }
   0x2   :  { %v23_v2 = vmul.f32 %v495_v0, %v495_v0  ;;  %v24_v3 = vmul.f32 %v500_v1, %v500_v1  ;;  %v120_v7 = vsel %vm25_vm0, %v384_v5, 0  ;;  %v385_v9 = vld [vmem:[%s566_s1 + $0x30] sm:$0xff]  }
   0x3   :  { %354 = vmatpush3.bf16.xpose.msra.mxu0 %v120_v7 }
   0x4   :  { %v26_v6 = vsel %vm25_vm0, %v23_v2, 0.0  ;;  %v29_v8 = vsel %vm25_vm0, %v24_v3, 0.0  ;;  %355 = vmatprep.subr.bf16.mxu0 %v460_v4 }
   0x5   :  { %27 = vadd.xlane.f32.xlu0 %v26_v6 }
   0x9   :  { %30 = vadd.xlane.f32.xlu0 %v29_v8 }
   0xa   :  { %11 = vsyncpa [#allocation5], 0  ;;  %v117_v10 = vsel %vm25_vm0, %v385_v9, 0  ;;  %v386_v11 = vld [vmem:[%s566_s1 + $0x28] sm:$0xff]   ;;  %v387_v13 = vld [vmem:[%s566_s1 + $0x20] sm:$0xff]   ;;  %vm461_vm1 = vmmov 0  }
   0xb   :  { %356 = vmatpush3.bf16.xpose.msra.mxu0 %v117_v10  ;;  %v114_v12 = vsel %vm25_vm0, %v386_v11, 0  ;;  %369 = vmatprep.mubr.msk.bf16.mxu0 %vm461_vm1, %v460_v4  ;;  %v111_v14 = vsel %vm25_vm0, %v387_v13, 0  ;;  %v388_v15 = vld [vmem:[%s566_s1 + $0x18] sm:$0xff]   ;;  %v389_v17 = vld [vmem:[%s566_s1 + $0x10] sm:$0xff]   ;;  %v21_v18 = vld [vmem:[%s567_s2] sm:$0xff]  ;;  %v462_v20 = vmov 0  }
   0xc   :  { %357 = vmatprep.subr.bf16.mxu0 %v460_v4  ;;  %v108_v16 = vsel %vm25_vm0, %v388_v15, 0  ;;  %v22_v19 = vld [vmem:[%s567_s2 + $0x8] sm:$0xff]  ;;  %382 = vset.pattern.permute.xlu1 %v462_v20  ;;  %vm191_vm2 = vcmp.gt.f32.partialorder %v21_v18, 0.5  ;;  %v105_v22 = vsel %vm25_vm0, %v389_v17, 0  ;;  %v391_v26 = vld [vmem:[%s566_s1] sm:$0xff]  }
   0xd   :  { %vm192_vm3 = vcmp.gt.f32.partialorder %v22_v19, 0.5  ;;  %383 = vset.pattern.permute.xlu0 %v462_v20  ;;  %v195_v21 = vsel %vm191_vm2, 1, %v462_v20  ;;  %v390_v24 = vld [vmem:[%s566_s1 + $0x8] sm:$0xff]   ;;  %v99_v27 = vsel %vm25_vm0, %v391_v26, 0  ;;  %s463_s1 = smov [#allocation2]  }
   0xe   :  { %198 = vperm.xlu1 %382, %v195_v21   ;;  %v196_v23 = vsel %vm192_vm3, 1, %v462_v20  ;;  %v102_v25 = vsel %vm25_vm0, %v390_v24, 0  ;;  %s296_s11 = sshll.u32 %s463_s1, 4  ;;  %s297_s11 = int_to_ptr.vmem [resolvable:$true] %s296_s11 }
   0xf   :  { %s416_s12 = scalar_lea.vmem %s297_s11, 128  ;;  %p421_p1 = scmp.lt.s32.totalorder %s297_s11, %s297_s11 }
  0x10   :  { %p417_p0 = scmp.ne.s32.totalorder %s297_s11, %s416_s12  ;;  %p422_p2 = scmp.lt.s32.totalorder %s416_s12, %s416_s12 }
  0x12   :  { %201 = vperm.xlu1 %382, %v196_v23   ;;  %p423_p3 = por %p422_p2, %p421_p1 }
  0x13   :  { %358 = vmatpush3.bf16.xpose.msra.mxu0 %v114_v12 }
  0x14   :  { %359 = vmatprep.subr.bf16.mxu0 %v460_v4  ;;  %p424_p4 = pnand %p423_p3, %p417_p0 }
  0x1b   :  { %360 = vmatpush3.bf16.xpose.msra.mxu0 %v111_v14 }
  0x1c   :  { %361 = vmatprep.subr.bf16.mxu0 %v460_v4 }
  0x23   :  { %362 = vmatpush3.bf16.xpose.msra.mxu0 %v108_v16 }
  0x24   :  { %363 = vmatprep.subr.bf16.mxu0 %v460_v4 }
  0x2b   :  { %364 = vmatpush3.bf16.xpose.msra.mxu0 %v105_v22 }
  0x2c   :  { %365 = vmatprep.subr.bf16.mxu0 %v460_v4 }
  0x33   :  { %366 = vmatpush3.bf16.xpose.msra.mxu0 %v102_v25 }
  0x34   :  { %367 = vmatprep.subr.bf16.mxu0 %v460_v4 }
  0x3b   :  { %368 = vmatpush3.bf16.xpose.msra.mxu0 %v99_v27 }
  0x89   :  { %v199_v56 = vpop.permute.xlu1 %198 }
  0x8a   :  { %vm203_vm6 = vcmp.eq.s32.totalorder %v199_v56, 1 }
  0x8d   :  { %v202_v7 = vpop.permute.xlu1 %201 }
  0x8e   :  { %v28_v28 = vpop.xlane.xlu0 %27  ;;  %vm204_vm9 = vcmp.eq.s32.totalorder %v202_v7, 1 }
  0x8f   :  { %v32_v29 = vmax.f32 %v28_v28, 1e-24 }
  0x91   :  { %392 = vrsqrt.f32 %v32_v29 }
  0x92   :  { %v31_v30 = vpop.xlane.xlu0 %30 }
  0x93   :  { %v33_v31 = vmax.f32 %v31_v30, 1e-24 }
  0x95   :  { %394 = vrsqrt.f32 %v33_v31  ;;  %v248_v31 = vlaneseq }
  0x9e   :  { %v393_v32 = vpop.eup %392 }
  0x9f   :  { %v36_v34 = vmul.f32 %v393_v32, %v495_v0 }
  0xa2   :  { %v395_v33 = vpop.eup %394 }
  0xa3   :  { %v37_v35 = vmul.f32 %v395_v33, %v500_v1 }
  0xa5   :  { %v38_v36 = vpack.c.bf16 %v37_v35, %v36_v34 }
  0xa7   :  { %370 = vmatmul.mubr.msk.bf16.vlgmr.msra.gmra.mxu0 %vm25_vm0, %v38_v36 }
 0x167   :  { %v156_v37 = vpop.f32.mrf.mxu0 }
 0x168   :  { %v330_v38 = vclamps-f32 %v156_v37, 0.9999999  ;;  %v333_v39 = vmul.f32 -1.442695, %v156_v37 }
 0x169   :  { %v371_v40 = vpop.f32.mrf.mxu0 }
 0x16a   :  { %v169_v41 = vmul.f32 %v330_v38, %v330_v38  ;;  %396 = vpow2.f32 %v333_v39  ;;  %v167_v60 = vmul.f32 0.87758255, %v330_v38  ;;  %v193_v0 = vsub.f32 0.0, %v330_v38 }
 0x16b   :  { %v159_v42 = vpop.f32.mrf.mxu0  ;;  %v249_v39 = vand.u32 127, %v248_v31 }
 0x16c   :  { %v171_v43 = vsub.f32 1.0, %v169_v41  ;;  %v331_v44 = vclamps-f32 %v159_v42, 0.9999999  ;;  %v334_v45 = vmul.f32 -1.442695, %v159_v42 }
 0x16d   :  { %v372_v46 = vpop.f32.mrf.mxu0  ;;  %vm252_vm13 = vcmp.lt.s32.totalorder %v249_v39, 16 }
 0x16e   :  { %398 = vrsqrt.f32 %v171_v43  ;;  %v170_v47 = vmul.f32 %v331_v44, %v331_v44  ;;  %vm175_vm4 = vcmp.eq.f32.partialorder %v171_v43, inf  ;;  %v178_v55 = vand.u32 2147483648, %v171_v43 }
 0x16f   :  { %400 = vpow2.f32 %v334_v45  ;;  %vm177_vm5 = vcmp.eq.f32.partialorder %v171_v43, 0.0  ;;  %v168_v5 = vmul.f32 0.87758255, %v331_v44  ;;  %v194_v10 = vsub.f32 0.0, %v331_v44 }
 0x170   :  { %v172_v48 = vsub.f32 1.0, %v170_v47 }
 0x172   :  { %402 = vrsqrt.f32 %v172_v48  ;;  %vm182_vm7 = vcmp.eq.f32.partialorder %v172_v48, inf  ;;  %v185_v63 = vand.u32 2147483648, %v172_v48  ;;  %vm184_vm8 = vcmp.eq.f32.partialorder %v172_v48, 0.0 }
 0x177   :  { %v397_v49 = vpop.eup %396 }
 0x178   :  { %v263_v50 = vadd.f32 1.0, %v397_v49 }
 0x17a   :  { %404 = vrcp.f32 %v263_v50  ;;  %v332_v50 = vsel %vm252_vm13, 1.0, %v460_v4 }
 0x17b   :  { %v399_v51 = vpop.eup %398 }
 0x17c   :  { %v401_v52 = vpop.eup %400  ;;  %v174_v53 = vmul.f32 %v399_v51, %v171_v43 }
 0x17d   :  { %v264_v54 = vadd.f32 1.0, %v401_v52 }
 0x17e   :  { %v176_v57 = vsel %vm175_vm4, %v171_v43, %v174_v53 }
 0x17f   :  { %v403_v58 = vpop.eup %402  ;;  %406 = vrcp.f32 %v264_v54  ;;  %v179_v59 = vsel %vm177_vm5, %v178_v55, %v176_v57 }
 0x180   :  { %v187_v61 = vmul.f32 0.47942555, %v179_v59  ;;  %v181_v62 = vmul.f32 %v403_v58, %v172_v48 }
 0x182   :  { %v189_v1 = vsub.f32 %v167_v60, %v187_v61  ;;  %v183_v2 = vsel %vm182_vm7, %v172_v48, %v181_v62 }
 0x183   :  { %v186_v3 = vsel %vm184_vm8, %v185_v63, %v183_v2 }
 0x184   :  { %v205_v6 = vsel %vm203_vm6, %v189_v1, %v193_v0  ;;  %v188_v8 = vmul.f32 0.47942555, %v186_v3 }
 0x185   :  { %v207_v9 = vsub.f32 0.0, %v205_v6 }
 0x186   :  { %v190_v11 = vsub.f32 %v168_v5, %v188_v8 }
 0x187   :  { %v215_v12 = vand.u32 2147483647, %v207_v9  ;;  %v405_v16 = vpop.eup %404  ;;  %v209_v36 = vmax.f32 %v207_v9, 0.0  ;;  %vm211_vm11 = vcmp.ne.f32.partialorder %v207_v9, %v207_v9 }
 0x188   :  { %v206_v13 = vsel %vm204_vm9, %v190_v11, %v194_v10 }
 0x189   :  { %v217_v14 = vsub.f32 0.0, %v215_v12  ;;  %v208_v15 = vsub.f32 0.0, %v206_v13 }
 0x18b   :  { %v219_v17 = vmul.f32 1.442695, %v217_v14  ;;  %v216_v18 = vand.u32 2147483647, %v208_v15  ;;  %v210_v44 = vmax.f32 %v208_v15, 0.0  ;;  %vm212_vm14 = vcmp.ne.f32.partialorder %v208_v15, %v208_v15 }
 0x18c   :  { %v407_v19 = vpop.eup %406 }
 0x18d   :  { %408 = vpow2.f32 %v219_v17  ;;  %v218_v20 = vsub.f32 0.0, %v216_v18  ;;  %v342_v21 = vpack.c.bf16 %v407_v19, %v405_v16 }
 0x18f   :  { %v221_v22 = vmul.f32 1.442695, %v218_v20  ;;  %343 = vst [vmem:[#allocation2] sm:$0xff] %v342_v21  }
 0x191   :  { %410 = vpow2.f32 %v221_v22 }
 0x19a   :  { %v409_v23 = vpop.eup %408 }
 0x19b   :  { %v223_v24 = vadd.f32 1.0, %v409_v23  ;;  %v226_v27 = vmul.f32 -0.5, %v409_v23  ;;  %v229_v30 = vand.u32 2147483647, %v409_v23 }
 0x19d   :  { %412 = vlog2.f32 %v223_v24  ;;  %v227_v28 = vadd.f32 1.0, %v226_v27  ;;  %vm230_vm10 = vcmp.lt.f32.partialorder %v229_v30, 0.0004427343 }
 0x19e   :  { %v411_v25 = vpop.eup %410 }
 0x19f   :  { %v232_v26 = vadd.f32 1.0, %v411_v25  ;;  %v235_v29 = vmul.f32 -0.5, %v411_v25  ;;  %v228_v34 = vmul.f32 %v409_v23, %v227_v28  ;;  %v238_v37 = vand.u32 2147483647, %v411_v25 }
 0x1a1   :  { %414 = vlog2.f32 %v232_v26  ;;  %v236_v35 = vadd.f32 1.0, %v235_v29  ;;  %vm239_vm12 = vcmp.lt.f32.partialorder %v238_v37, 0.0004427343 }
 0x1a3   :  { %v237_v43 = vmul.f32 %v411_v25, %v236_v35 }
 0x1aa   :  { %v413_v32 = vpop.eup %412 }
 0x1ab   :  { %v225_v33 = vmul.f32 0.6931472, %v413_v32 }
 0x1ad   :  { %v231_v38 = vsel %vm230_vm10, %v228_v34, %v225_v33 }
 0x1ae   :  { %v415_v40 = vpop.eup %414  ;;  %v241_v41 = vadd.f32 %v231_v38, %v209_v36 }
 0x1af   :  { %v234_v42 = vmul.f32 0.6931472, %v415_v40 }
 0x1b0   :  { %v243_v45 = vsel %vm211_vm11, %v207_v9, %v241_v41 }
 0x1b1   :  { %v240_v46 = vsel %vm239_vm12, %v237_v43, %v234_v42  ;;  %v245_v48 = vsub.f32 0.0, %v243_v45 }
 0x1b2   :  { %v242_v47 = vadd.f32 %v240_v46, %v210_v44 }
 0x1b3   :  { %v255_v52 = vmul.f32 %v332_v50, %v245_v48 }
 0x1b4   :  { %v244_v49 = vsel %vm212_vm14, %v208_v15, %v242_v47 }
 0x1b5   :  { %v246_v51 = vsub.f32 0.0, %v244_v49 }
 0x1b7   :  { %v256_v53 = vmul.f32 %v332_v50, %v246_v51 }
 0x1b9   :  { %v279_v54 = vadd.f32 %v256_v53, %v255_v52 }
 0x1bb   :  { %280 = vadd.xlane.f32.xlu0 %v279_v54 }
 0x1bc   :  { %427 = shalt.err (!%p424_p4)
}
 0x1bd   :  { %s464_s13 = smov 64   ;;  %s465_s14 = smov 4  }
 0x1be   :  { %302 = dma.vmem_to_hbm [thread:$0]  %s297_s11, 128, %s568_s3, [#allocation3], %s464_s13, %s464_s13, %s465_s14  }
 0x1bf   :  { %s466_s17 = smov [#allocation4]  }
 0x1c0   :  { %s309_s18 = sshll.u32 %s466_s17, 4  ;;  %s310_s18 = int_to_ptr.vmem [resolvable:$true] %s309_s18 }
 0x1c1   :  { %s436_s20 = scalar_lea.vmem %s310_s18, 128  ;;  %p441_p6 = scmp.lt.s32.totalorder %s310_s18, %s310_s18 }
 0x1c2   :  { %p437_p5 = scmp.ne.s32.totalorder %s310_s18, %s436_s20  ;;  %p442_p7 = scmp.lt.s32.totalorder %s436_s20, %s436_s20 }
 0x1c4   :  { %p443_p8 = por %p442_p7, %p441_p6 }
 0x1c6   :  { %p444_p9 = pnand %p443_p8, %p437_p5 }
 0x244   :  { %v281_v4 = vpop.xlane.xlu0 %280 }
 0x245   :  { %v282_v55 = vrot.slane %v281_v4, 4 }
 0x247   :  { %v283_v56 = vadd.f32 %v282_v55, %v281_v4 }
 0x249   :  { %v284_v57 = vrot.slane %v283_v56, 2 }
 0x24b   :  { %v285_v58 = vadd.f32 %v284_v57, %v283_v56 }
 0x24d   :  { %v286_v59 = vrot.slane %v285_v58, 1 }
 0x24f   :  { %v287_v60 = vadd.f32 %v286_v59, %v285_v58 }
 0x251   :  { %373 = vpush %v287_v60 }
 0x282   :  { %s374_s19 = spop %373 }
 0x283   :  { %v289_v61 = vstv %s374_s19 }
 0x284   :  { %290 = vst [vmem:[#allocation4] sm:$0xff] %v289_v61 }
 0x285   :  { %447 = shalt.err (!%p444_p9)
}
 0x286   :  { %312 = dma.vmem_to_hbm [thread:$0]  %s310_s18, 128, %s569_s4, [#allocation5]  }
 0x287   :  { %456 = dma.done.wait [#allocation3], 128  }
 0x288   :  { %457 = vsyncadd [#allocation3], 4294967168 }
 0x289   :  { %458 = dma.done.wait [#allocation5], 128  }
 0x28a   :  { %459 = vsyncadd [#allocation5], 4294967168 }
 0x28b   :  { %319 = vsyncpa [#allocation3], 1 }
 0x28c   :  { %320 = vsyncpa [#allocation5], 1 }

</bundles_post_ra>
